<compile_context>
chip_gen: v6e
topology: v6e:2x2x1
jax: 0.10.0
libtpu: 0.0.40
codegen_flags: <defaults>
</compile_context>

<pallas_src>
import math

import jax
import jax.numpy as jnp
from jax.experimental import pallas as pl
from jax.experimental.pallas import tpu as pltpu

D_MODEL = 512
MAX_LEN = 100

_VMEM_BUDGET_BYTES = 24 << 20      # conservative vs v7x's 32 MiB scoped default
_PE_RESIDENT_MAX_BYTES = 4 << 20   # keep pe resident only while it is cheap
_PALLAS_MIN_BYTES = 1 << 20        # below this, plain XLA fused add is faster


def make_sinusoidal_pe(max_len: int, d_model: int) -> jnp.ndarray:
    """Deterministic buffer construction (matches the torch __init__)."""
    position = jnp.arange(0, max_len, dtype=jnp.float32)[:, None]            # (L, 1)
    div_term = jnp.exp(jnp.arange(0, d_model, 2, dtype=jnp.float32)
                       * (-math.log(10000.0) / d_model))                      # (D/2,)
    pe = jnp.zeros((max_len, d_model), dtype=jnp.float32)
    pe = pe.at[:, 0::2].set(jnp.sin(position * div_term))
    pe = pe.at[:, 1::2].set(jnp.cos(position * div_term))
    return pe[:, None, :]                                                      # (L, 1, D)


def _add_pe_resident_kernel(x_ref, pe_ref, o_ref):
    # x_ref/o_ref: (ts, batch*d). pe_ref: whole (padded_seq, batch*d) slab,
    # resident in VMEM across the grid; slice the rows of this seq tile.
    ts = x_ref.shape[0]
    start = pl.multiple_of(pl.program_id(0) * ts, ts)
    o_ref[...] = x_ref[...] + pe_ref[pl.ds(start, ts), :]


def _add_pe_tiled_kernel(x_ref, pe_ref, o_ref):
    # Fallback when pe is too large to keep resident: pe tiled like x.
    o_ref[...] = x_ref[...] + pe_ref[...]


def positional_encoding_forward(x: jnp.ndarray, pe: jnp.ndarray,
                                *, seq_tile: int | None = None,
                                force_pallas: bool = False) -> jnp.ndarray:
    """x: (seq, batch, d_model); pe: (max_len, 1, d_model)."""
    seq, batch, d_model = x.shape
    pe_slice = pe[:seq, 0, :].astype(x.dtype)                # (seq, d_model)

    itemsize = jnp.dtype(x.dtype).itemsize
    if not force_pallas and seq * batch * d_model * itemsize < _PALLAS_MIN_BYTES:
        # Launch + pipeline prologue would dominate; plain fused add is faster.
        return x + pe_slice[:, None, :]

    # Fold batch into the lane axis: (seq, batch, d) -> (seq, batch*d) is a free
    # contiguous reshape and gives dense 8x128 vregs for any batch size.
    width = batch * d_model
    row_bytes = width * itemsize
    x2d = x.reshape(seq, width)
    pe2d = jnp.tile(pe_slice, (1, batch))                    # row s = pe[s] per batch

    pe_resident = seq * row_bytes <= _PE_RESIDENT_MAX_BYTES

    # ---- seq tile selection --------------------------------------------------
    if seq <= 8:
        ts = seq                              # single full block (full dim is legal)
    else:
        if seq_tile is not None:
            ts = max(8, (int(seq_tile) // 8) * 8)
        else:
            target_block_bytes = 2 << 20      # ~2 MiB per x block
            ts = max(8, (target_block_bytes // row_bytes // 8) * 8)
        # Guarantee >= 2 grid steps so the (parallel) seq axis can be split
        # across both TensorCores on v7x.
        two_step_cap = ((-(-seq // 2) + 7) // 8) * 8
        ts = min(ts, two_step_cap)
        # VMEM budget: double-buffered x + out blocks (+ pe, resident or tiled).
        if pe_resident:
            avail = max(0, _VMEM_BUDGET_BYTES - 2 * seq * row_bytes)
            vmem_cap = avail // (4 * row_bytes)
        else:
            vmem_cap = _VMEM_BUDGET_BYTES // (6 * row_bytes)
        ts = min(ts, max(8, (vmem_cap // 8) * 8))

    grid = pl.cdiv(seq, ts)

    x_spec = pl.BlockSpec((ts, width), lambda i: (i, 0))
    if pe_resident:
        padded_seq = grid * ts
        if padded_seq != seq:
            # Pad so the in-kernel pl.ds slice of the last (partial) tile stays
            # in bounds; the padded output rows are clipped on writeback anyway.
            pe2d = jnp.pad(pe2d, ((0, padded_seq - seq), (0, 0)))
        pe_spec = pl.BlockSpec((padded_seq, width), lambda i: (0, 0))
        kernel = _add_pe_resident_kernel
    else:
        pe_spec = pl.BlockSpec((ts, width), lambda i: (i, 0))
        kernel = _add_pe_tiled_kernel

    out2d = pl.pallas_call(
        kernel,
        out_shape=jax.ShapeDtypeStruct((seq, width), x.dtype),
        grid_spec=pltpu.PrefetchScalarGridSpec(
            num_scalar_prefetch=0,
            grid=(grid,),
            in_specs=[x_spec, pe_spec],
            out_specs=pl.BlockSpec((ts, width), lambda i: (i, 0)),
        ),
        compiler_params=pltpu.CompilerParams(
            dimension_semantics=("parallel",),
        ),
        input_output_aliases={0: 0},          # output reuses x's HBM buffer
    )(x2d, pe2d)

    return out2d.reshape(seq, batch, d_model)


if __name__ == "__main__":
    pe = make_sinusoidal_pe(MAX_LEN, D_MODEL)
    fwd = jax.jit(positional_encoding_forward,
                  static_argnames=("seq_tile", "force_pallas"))

    key = jax.random.PRNGKey(0)
    k1, k2 = jax.random.split(key)

    # 1) Small, module-consistent demo shape (seq=8, batch=2, d_model=512),
    #    forcing the Pallas path so the kernel itself is exercised.
    x1 = jax.random.normal(k1, (8, 2, D_MODEL), dtype=jnp.float32)
    ref1 = x1 + pe[:8]                                  # torch broadcasting semantics
    out1 = jax.block_until_ready(fwd(x1, pe, force_pallas=True))
    assert out1.shape == x1.shape and out1.dtype == x1.dtype
    assert jnp.allclose(out1, ref1, atol=1e-6, rtol=1e-6)

    # 2) Full max_len sequence: multi-step parallel grid, partial last tile,
    #    VMEM-resident pe sliced with pl.ds inside the kernel.
    x2 = jax.random.normal(k2, (MAX_LEN, 2, D_MODEL), dtype=jnp.float32)
    ref2 = x2 + pe[:MAX_LEN]
    out2 = jax.block_until_ready(fwd(x2, pe, force_pallas=True))
    assert out2.shape == x2.shape and out2.dtype == x2.dtype
    assert jnp.allclose(out2, ref2, atol=1e-6, rtol=1e-6)

    print("KERNEL_OK")
</pallas_src>

<mosaic_0001>
module attributes {stable_mosaic.version = 11 : i64} {
  func.func @_add_pe_resident_kernel(%arg0: i32, %arg1: memref<8x1024xf32, #tpu.memory_space<vmem>>, %arg2: memref<8x1024xf32, #tpu.memory_space<vmem>>, %arg3: memref<8x1024xf32, #tpu.memory_space<vmem>>) attributes {dimension_semantics = [#tpu.dimension_semantics<parallel>], iteration_bounds = array<i64: 1>, scalar_prefetch = 0 : i64, scratch_operands = 0 : i64, tpu.core_type = #tpu.core_type<tc>, window_params = [{transform_indices = @transform_0, window_bounds = array<i64: 8, 1024>}, {pipeline_mode = #tpu.pipeline_mode<synchronous>, transform_indices = @transform_1, window_bounds = array<i64: 8, 1024>}, {transform_indices = @transform_2, window_bounds = array<i64: 8, 1024>}]} {
    %c8_i32 = arith.constant 8 : i32
    %0 = arith.muli %arg0, %c8_i32 : i32
    %1 = tpu.assume_multiple %0, 8 : i32
    %c0 = arith.constant 0 : index
    %c0_0 = arith.constant 0 : index
    %2 = vector.load %arg1[%c0, %c0_0] : memref<8x1024xf32, #tpu.memory_space<vmem>>, vector<8x1024xf32>
    %3 = arith.index_cast %1 : i32 to index
    %c0_1 = arith.constant 0 : index
    %4 = vector.load %arg2[%3, %c0_1] : memref<8x1024xf32, #tpu.memory_space<vmem>>, vector<8x1024xf32>
    %5 = arith.addf %2, %4 : vector<8x1024xf32>
    %c0_2 = arith.constant 0 : index
    %c0_3 = arith.constant 0 : index
    %6 = vector.load %arg3[%c0_2, %c0_3] : memref<8x1024xf32, #tpu.memory_space<vmem>>, vector<8x1024xf32>
    tpu.vector_store %arg3[%c0_2, %c0_3], %5 {strides = array<i32>} : memref<8x1024xf32, #tpu.memory_space<vmem>>, vector<8x1024xf32>,
    return
  }
  func.func @transform_0(%arg0: i32) -> (i32, i32) {
    %c0_i32 = arith.constant 0 : i32
    %c0_i32_0 = arith.constant 0 : i32
    return %arg0, %c0_i32 : i32, i32
  }
  func.func @transform_1(%arg0: i32) -> (i32, i32) {
    %c0_i32 = arith.constant 0 : i32
    %c0_i32_0 = arith.constant 0 : i32
    %c0_i32_1 = arith.constant 0 : i32
    return %c0_i32, %c0_i32_0 : i32, i32
  }
  func.func @transform_2(%arg0: i32) -> (i32, i32) {
    %c0_i32 = arith.constant 0 : i32
    %c0_i32_0 = arith.constant 0 : i32
    return %arg0, %c0_i32 : i32, i32
  }
}

</mosaic_0001>

<bundles_post_ra>
// kernel: positional_encoding_forward.1
= control target key start
LH: loop header
LB: loop body
LE: loop exit
PB: predicated region body
PF: predicated region fallthrough
CT: control target
= control target key end

     0   :  { %s142_s0 = inlined_call_operand.vmem [shape: f32[8,1024], index: 0, kind: input, shape index: {}, may-alias: {0,2}]   ;;  %s143_s1 = inlined_call_operand.vmem [shape: f32[8,1024], index: 1, kind: input, shape index: {}]   ;;  %s144_s2 = inlined_call_operand.vmem [shape: f32[8,1024], index: 2, kind: output, shape index: {}, may-alias: {0,2}]  }
   0x1   :  { %v12_v0 = vld [vmem:[%s142_s0] sm:$0xff]  ;;  %v13_v2 = vld [vmem:[%s142_s0 + $0x8] sm:$0xff]  ;;  %v14_v5 = vld [vmem:[%s142_s0 + $0x10] sm:$0xff] }
   0x2   :  { %v25_v1 = vld [vmem:[%s143_s1] sm:$0xff]  ;;  %v26_v4 = vld [vmem:[%s143_s1 + $0x8] sm:$0xff]  ;;  %v27_v6 = vld [vmem:[%s143_s1 + $0x10] sm:$0xff] }
   0x3   :  { %v33_v3 = vadd.f32 %v25_v1, %v12_v0  ;;  %v34_v7 = vadd.f32 %v26_v4, %v13_v2  ;;  %v35_v8 = vadd.f32 %v27_v6, %v14_v5  ;;  %v15_v9 = vld [vmem:[%s142_s0 + $0x18] sm:$0xff]  ;;  %v16_v11 = vld [vmem:[%s142_s0 + $0x20] sm:$0xff]  ;;  %v30_v15 = vld [vmem:[%s143_s1 + $0x28] sm:$0xff] }
   0x4   :  { %v28_v10 = vld [vmem:[%s143_s1 + $0x18] sm:$0xff]  ;;  %v29_v13 = vld [vmem:[%s143_s1 + $0x20] sm:$0xff]  ;;  %v31_v19 = vld [vmem:[%s143_s1 + $0x30] sm:$0xff] }
   0x5   :  { %41 = vst [vmem:[%s144_s2] sm:$0xff] %v33_v3  ;;  %v36_v12 = vadd.f32 %v28_v10, %v15_v9  ;;  %v37_v16 = vadd.f32 %v29_v13, %v16_v11  ;;  %v32_v22 = vld [vmem:[%s143_s1 + $0x38] sm:$0xff] }
   0xc   :  { %v17_v14 = vld [vmem:[%s142_s0 + $0x28] sm:$0xff] }
   0xd   :  { %42 = vst [vmem:[%s144_s2 + $0x8] sm:$0xff] %v34_v7  ;;  %43 = vst [vmem:[%s144_s2 + $0x10] sm:$0xff] %v35_v8  ;;  %v38_v17 = vadd.f32 %v30_v15, %v17_v14 }
  0x14   :  { %v18_v18 = vld [vmem:[%s142_s0 + $0x30] sm:$0xff]  ;;  %v19_v20 = vld [vmem:[%s142_s0 + $0x38] sm:$0xff] }
  0x15   :  { %44 = vst [vmem:[%s144_s2 + $0x18] sm:$0xff] %v36_v12  ;;  %v39_v21 = vadd.f32 %v31_v19, %v18_v18  ;;  %45 = vst [vmem:[%s144_s2 + $0x20] sm:$0xff] %v37_v16  ;;  %v40_v23 = vadd.f32 %v32_v22, %v19_v20 }
  0x16   :  { %46 = vst [vmem:[%s144_s2 + $0x28] sm:$0xff] %v38_v17 }
  0x17   :  { %47 = vst [vmem:[%s144_s2 + $0x30] sm:$0xff] %v39_v21  ;;  %48 = vst [vmem:[%s144_s2 + $0x38] sm:$0xff] %v40_v23 }

</bundles_post_ra>
